<compile_context>
chip_gen: v7x
topology: tpu7x:2x2x1
jax: 0.10.0
libtpu: 0.0.40
codegen_flags: <defaults>
</compile_context>

<pallas_src>
import math

import jax
import jax.numpy as jnp
from jax.experimental import pallas as pl
from jax.experimental.pallas import tpu as pltpu

# Fold-time, in-kernel and reference matmuls all at full f32 precision so the fused
# (folded ||.||^2 expansion) form agrees with the plain cdist reference to ~1e-5.
jax.config.update("jax_default_matmul_precision", "highest")


def _round_up(n, m):
    return ((n + m - 1) // m) * m


def _kde_logjoint_kernel(x_ref, m_ref, r_ref, ws_ref, bs_ref, o_ref):
    """Fused per-(component, batch-tile) block.

    x_ref:  (Bt, D)        query tile
    m_ref:  (1, D, Npad)   pre-folded center matrix for this component
    r_ref:  (1, 1, Npad)   per-center constants (coeff + log prior folded in; pad cols = -1e30)
    ws_ref: (1, D, K)      sqrt(-scale) * PCA weight
    bs_ref: (1, 1, K)      sqrt(-scale) * PCA bias
    o_ref:  (1, Bt, 1)     logjoint column for this (component, batch-tile)
    """
    x = x_ref[...]                                                                  # (Bt, D) f32

    # Lane-dense GEMM over D; logits already carry every per-center constant.
    logits = jnp.dot(x, m_ref[0], preferred_element_type=jnp.float32) + r_ref[0]    # (Bt, Npad)

    mx = jnp.max(logits, axis=1, keepdims=True)                                     # (Bt, 1)
    lse = mx + jnp.log(jnp.sum(jnp.exp(logits - mx), axis=1, keepdims=True))        # (Bt, 1)

    # Hoisted ||proj||^2 correction (bandwidth scale pre-folded via sqrt(-scale)).
    proj = jnp.dot(x, ws_ref[0], preferred_element_type=jnp.float32) + bs_ref[0]    # (Bt, K)
    p_sq = jnp.sum(proj * proj, axis=1, keepdims=True)                              # (Bt, 1)

    # Output slab is only B*C floats total, so this narrow store costs nothing next to
    # the GEMM + LSE work, and avoids any in-kernel relayout of the (Bt, 1) result.
    o_ref[0] = lse - p_sq


def kde_logjoint(x, M, r, ws, bs, *, b_tile_max=512):
    """Single fused pallas_call over (component, batch-tile); returns (batch, n_components_mix)."""
    batch, d = x.shape
    c, _, n_pad = M.shape
    k = ws.shape[-1]
    x = x.astype(jnp.float32)

    # Batch tiling: one sublane-aligned tile for small batches; 512-row tiles otherwise.
    if batch <= b_tile_max:
        b_pad = _round_up(batch, 8)
        b_tile = b_pad
    else:
        b_tile = b_tile_max
        b_pad = _round_up(batch, b_tile)
    if b_pad != batch:
        x = jnp.pad(x, ((0, b_pad - batch), (0, 0)))
    n_btiles = b_pad // b_tile

    out = pl.pallas_call(
        _kde_logjoint_kernel,
        out_shape=jax.ShapeDtypeStruct((c, b_pad, 1), jnp.float32),
        grid=(c, n_btiles),
        in_specs=[
            pl.BlockSpec((b_tile, d), lambda ci, bi: (bi, 0)),       # x
            pl.BlockSpec((1, d, n_pad), lambda ci, bi: (ci, 0, 0)),  # M
            pl.BlockSpec((1, 1, n_pad), lambda ci, bi: (ci, 0, 0)),  # r
            pl.BlockSpec((1, d, k), lambda ci, bi: (ci, 0, 0)),      # ws
            pl.BlockSpec((1, 1, k), lambda ci, bi: (ci, 0, 0)),      # bs
        ],
        out_specs=pl.BlockSpec((1, b_tile, 1), lambda ci, bi: (ci, bi, 0)),
        compiler_params=pltpu.CompilerParams(
            dimension_semantics=("parallel", "parallel")),
    )(x, M, r, ws, bs)

    # (C, B, 1) -> (B, C), dropping batch padding.
    return out[:, :batch, 0].T


def _fit_pca(X, n_components):
    """Deterministic PCA init (replaces sklearn.PCA.fit_transform); eigh of the DxD covariance."""
    mean = jnp.mean(X, axis=0)
    Xc = X - mean
    cov = Xc.T @ Xc
    _, vecs = jnp.linalg.eigh(cov)                      # ascending eigenvalues
    w_t = vecs[:, ::-1][:, :n_components]               # (D, K) == pca.components_.T
    bias = -(mean @ w_t)                                # (K,)  == -mean @ components_.T
    x_pca = Xc @ w_t                                    # (N, K)
    return w_t, bias, x_pca


class KernelDistribution:
    """JAX/Pallas port of the PyTorch KernelDistribution forward pass."""

    def __init__(self, *X_, n_components=15, bandwidth=1.5):
        # TODO(synk): sklearn GridSearchCV bandwidth selection has no JAX/Pallas equivalent here;
        # a fixed deterministic bandwidth is used instead.
        counts = jnp.array([X.shape[0] for X in X_], dtype=jnp.float32)
        self.prior = counts / jnp.sum(counts)
        log_prior = jnp.log(self.prior)

        # Raw per-component parameters (also used by the pure-JAX reference).
        self.params = []
        for X in X_:
            w_t, bias, x_pca = _fit_pca(X, n_components)
            self.params.append(
                dict(w_t=w_t, bias=bias, x_pca=x_pca, bandwidth=float(bandwidth)))

        n_max = max(p["x_pca"].shape[0] for p in self.params)
        n_pad = _round_up(n_max, 128)       # lane-dense logits
        # TODO(synk): for very large center counts the N axis should also be grid-tiled with an
        # online-LSE accumulator (flash-attention style); at these sizes one chunk fits VMEM.

        per_m, per_r, per_ws, per_bs = [], [], [], []
        for p, lp in zip(self.params, log_prior):
            w_t, bias, x_pca, h = p["w_t"], p["bias"], p["x_pca"], p["bandwidth"]
            n, k = x_pca.shape
            scale = -0.5 / (h * h)
            coeff = (-math.log(n) - math.log(2.0 * math.pi) * k / 2.0
                     - math.log(h) * k)

            M = (-2.0 * scale) * (w_t @ x_pca.T)                           # (D, N)
            r = (scale * jnp.sum(x_pca * x_pca, axis=1)
                 + (-2.0 * scale) * (bias @ x_pca.T)
                 + coeff + lp)                                             # (N,)

            # Pad the centers axis; padded columns contribute exp(-1e30) = 0 to the LSE.
            M = jnp.pad(M, ((0, 0), (0, n_pad - n)))
            r = jnp.pad(r, (0, n_pad - n), constant_values=-1e30)

            sq = math.sqrt(-scale)
            per_m.append(M.astype(jnp.float32))
            per_r.append(r.reshape(1, -1).astype(jnp.float32))
            per_ws.append((sq * w_t).astype(jnp.float32))
            per_bs.append((sq * bias).reshape(1, -1).astype(jnp.float32))

        self.M = jnp.stack(per_m)           # (C, D, Npad)
        self.r = jnp.stack(per_r)           # (C, 1, Npad)
        self.ws = jnp.stack(per_ws)         # (C, D, K)
        self.bs = jnp.stack(per_bs)         # (C, 1, K)

    def __call__(self, x):
        # torch.jit.fork/wait parallelism -> one fused gridded kernel over mixture components.
        return kde_logjoint(x, self.M, self.r, self.ws, self.bs)


def _reference_forward(x, params, prior):
    """Pure-JAX reference mirroring the PyTorch semantics (cdist^2 / (-2h^2) logsumexp + coeff)."""
    cols = []
    for p in params:
        proj = x @ p["w_t"] + p["bias"]
        d2 = jnp.sum((proj[:, None, :] - p["x_pca"][None, :, :]) ** 2, axis=-1)
        n, k = p["x_pca"].shape
        h = p["bandwidth"]
        coeff = -math.log(n) - math.log(2.0 * math.pi) * k / 2.0 - math.log(h) * k
        cols.append(jax.scipy.special.logsumexp(d2 / (-2.0 * h * h), axis=1) + coeff)
    return jnp.stack(cols, axis=1) + jnp.log(prior)[None, :]


if __name__ == "__main__":
    key = jax.random.PRNGKey(0)
    k1, k2, k3 = jax.random.split(key, 3)

    D = 32                                   # input feature dim
    X0 = jax.random.normal(k1, (64, D), dtype=jnp.float32)
    X1 = jax.random.normal(k2, (48, D), dtype=jnp.float32) * 1.5 + 0.5
    x = jax.random.normal(k3, (8, D), dtype=jnp.float32)   # batch of queries

    model = KernelDistribution(X0, X1, n_components=15, bandwidth=1.5)

    out = model(x)
    out = jax.block_until_ready(out)

    ref = _reference_forward(x, model.params, model.prior)
    assert out.shape == (8, 2), out.shape
    assert jnp.allclose(out, ref, rtol=1e-3, atol=1e-3), (out, ref)

    print("KERNEL_OK")
</pallas_src>

<mosaic_0001>
module attributes {stable_mosaic.version = 11 : i64} {
  func.func @_kde_logjoint_kernel(%arg0: i32, %arg1: i32, %arg2: memref<8x32xf32, #tpu.memory_space<vmem>>, %arg3: memref<1x32x128xf32, #tpu.memory_space<vmem>>, %arg4: memref<1x1x128xf32, #tpu.memory_space<vmem>>, %arg5: memref<1x32x15xf32, #tpu.memory_space<vmem>>, %arg6: memref<1x1x15xf32, #tpu.memory_space<vmem>>, %arg7: memref<1x8x1xf32, #tpu.memory_space<vmem>>) attributes {dimension_semantics = [#tpu.dimension_semantics<parallel>, #tpu.dimension_semantics<parallel>], iteration_bounds = array<i64: 2, 1>, scalar_prefetch = 0 : i64, scratch_operands = 0 : i64, tpu.core_type = #tpu.core_type<tc>, window_params = [{transform_indices = @transform_0, window_bounds = array<i64: 8, 32>}, {transform_indices = @transform_1, window_bounds = array<i64: 1, 32, 128>}, {transform_indices = @transform_2, window_bounds = array<i64: 1, 1, 128>}, {transform_indices = @transform_3, window_bounds = array<i64: 1, 32, 15>}, {transform_indices = @transform_4, window_bounds = array<i64: 1, 1, 15>}, {transform_indices = @transform_5, window_bounds = array<i64: 1, 8, 1>}]} {
    %c0 = arith.constant 0 : index
    %c0_0 = arith.constant 0 : index
    %0 = vector.load %arg2[%c0, %c0_0] : memref<8x32xf32, #tpu.memory_space<vmem>>, vector<8x32xf32>
    %c0_1 = arith.constant 0 : index
    %c0_2 = arith.constant 0 : index
    %c0_3 = arith.constant 0 : index
    %1 = vector.load %arg3[%c0_1, %c0_2, %c0_3] : memref<1x32x128xf32, #tpu.memory_space<vmem>>, vector<1x32x128xf32>
    %2 = vector.shape_cast %1 : vector<1x32x128xf32> to vector<32x128xf32>
    %cst = arith.constant dense<0.000000e+00> : vector<8x128xf32>
    %3 = tpu.matmul %0, %2, %cst {dimension_numbers = #tpu.dot_dimension_numbers<[1], [0], [0], [1], [0, 0, 1, 1], [], []>, precision = #tpu.contract_precision<fp32>} : vector<8x32xf32>, vector<32x128xf32>, vector<8x128xf32> -> vector<8x128xf32>
    %c0_4 = arith.constant 0 : index
    %c0_5 = arith.constant 0 : index
    %c0_6 = arith.constant 0 : index
    %4 = vector.load %arg4[%c0_4, %c0_5, %c0_6] : memref<1x1x128xf32, #tpu.memory_space<vmem>>, vector<1x1x128xf32>
    %5 = vector.shape_cast %4 : vector<1x1x128xf32> to vector<1x128xf32>
    %6 = vector.broadcast %5 : vector<1x128xf32> to vector<8x128xf32>
    %7 = arith.addf %3, %6 : vector<8x128xf32>
    %cst_7 = arith.constant dense<0xFF800000> : vector<8xf32>
    %8 = vector.multi_reduction <maximumf>, %7, %cst_7 [1] : vector<8x128xf32> to vector<8xf32>
    %9 = vector.shape_cast %8 : vector<8xf32> to vector<8x1xf32>
    %10 = vector.broadcast %9 : vector<8x1xf32> to vector<8x128xf32>
    %11 = arith.subf %7, %10 : vector<8x128xf32>
    %12 = math.exp %11 : vector<8x128xf32>
    %cst_8 = arith.constant dense<0.000000e+00> : vector<8xf32>
    %13 = vector.multi_reduction <add>, %12, %cst_8 [1] : vector<8x128xf32> to vector<8xf32>
    %14 = vector.shape_cast %13 : vector<8xf32> to vector<8x1xf32>
    %15 = math.log %14 : vector<8x1xf32>
    %16 = arith.addf %9, %15 : vector<8x1xf32>
    %c0_9 = arith.constant 0 : index
    %c0_10 = arith.constant 0 : index
    %c0_11 = arith.constant 0 : index
    %17 = vector.load %arg5[%c0_9, %c0_10, %c0_11] : memref<1x32x15xf32, #tpu.memory_space<vmem>>, vector<1x32x15xf32>
    %18 = vector.shape_cast %17 : vector<1x32x15xf32> to vector<32x15xf32>
    %cst_12 = arith.constant dense<0.000000e+00> : vector<8x15xf32>
    %19 = tpu.matmul %0, %18, %cst_12 {dimension_numbers = #tpu.dot_dimension_numbers<[1], [0], [0], [1], [0, 0, 1, 1], [], []>, precision = #tpu.contract_precision<fp32>} : vector<8x32xf32>, vector<32x15xf32>, vector<8x15xf32> -> vector<8x15xf32>
    %c0_13 = arith.constant 0 : index
    %c0_14 = arith.constant 0 : index
    %c0_15 = arith.constant 0 : index
    %20 = vector.load %arg6[%c0_13, %c0_14, %c0_15] : memref<1x1x15xf32, #tpu.memory_space<vmem>>, vector<1x1x15xf32>
    %21 = vector.shape_cast %20 : vector<1x1x15xf32> to vector<1x15xf32>
    %22 = vector.broadcast %21 : vector<1x15xf32> to vector<8x15xf32>
    %23 = arith.addf %19, %22 : vector<8x15xf32>
    %24 = arith.mulf %23, %23 : vector<8x15xf32>
    %cst_16 = arith.constant dense<0.000000e+00> : vector<8xf32>
    %25 = vector.multi_reduction <add>, %24, %cst_16 [1] : vector<8x15xf32> to vector<8xf32>
    %26 = vector.shape_cast %25 : vector<8xf32> to vector<8x1xf32>
    %27 = arith.subf %16, %26 : vector<8x1xf32>
    %c0_17 = arith.constant 0 : index
    %c0_18 = arith.constant 0 : index
    %c0_19 = arith.constant 0 : index
    %28 = vector.load %arg7[%c0_17, %c0_18, %c0_19] : memref<1x8x1xf32, #tpu.memory_space<vmem>>, vector<1x8x1xf32>
    %29 = vector.shape_cast %28 : vector<1x8x1xf32> to vector<8x1xf32>
    %30 = vector.shape_cast %27 : vector<8x1xf32> to vector<1x8x1xf32>
    tpu.vector_store %arg7[%c0_17, %c0_18, %c0_19], %30 {strides = array<i32>} : memref<1x8x1xf32, #tpu.memory_space<vmem>>, vector<1x8x1xf32>,
    return
  }
  func.func @transform_0(%arg0: i32, %arg1: i32) -> (i32, i32) {
    %c0_i32 = arith.constant 0 : i32
    %c0_i32_0 = arith.constant 0 : i32
    return %arg1, %c0_i32 : i32, i32
  }
  func.func @transform_1(%arg0: i32, %arg1: i32) -> (i32, i32, i32) {
    %c0_i32 = arith.constant 0 : i32
    %c0_i32_0 = arith.constant 0 : i32
    %c0_i32_1 = arith.constant 0 : i32
    return %arg0, %c0_i32, %c0_i32_0 : i32, i32, i32
  }
  func.func @transform_2(%arg0: i32, %arg1: i32) -> (i32, i32, i32) {
    %c0_i32 = arith.constant 0 : i32
    %c0_i32_0 = arith.constant 0 : i32
    %c0_i32_1 = arith.constant 0 : i32
    return %arg0, %c0_i32, %c0_i32_0 : i32, i32, i32
  }
  func.func @transform_3(%arg0: i32, %arg1: i32) -> (i32, i32, i32) {
    %c0_i32 = arith.constant 0 : i32
    %c0_i32_0 = arith.constant 0 : i32
    %c0_i32_1 = arith.constant 0 : i32
    return %arg0, %c0_i32, %c0_i32_0 : i32, i32, i32
  }
  func.func @transform_4(%arg0: i32, %arg1: i32) -> (i32, i32, i32) {
    %c0_i32 = arith.constant 0 : i32
    %c0_i32_0 = arith.constant 0 : i32
    %c0_i32_1 = arith.constant 0 : i32
    return %arg0, %c0_i32, %c0_i32_0 : i32, i32, i32
  }
  func.func @transform_5(%arg0: i32, %arg1: i32) -> (i32, i32, i32) {
    %c0_i32 = arith.constant 0 : i32
    %c0_i32_0 = arith.constant 0 : i32
    return %arg0, %arg1, %c0_i32 : i32, i32, i32
  }
}

</mosaic_0001>

<bundles_post_ra>
// kernel: tpu_custom_call.1
= control target key start
LH: loop header
LB: loop body
LE: loop exit
PB: predicated region body
PF: predicated region fallthrough
CT: control target
= control target key end

     0   :  { %s1831_s18 = smov 0   ;;  %s1833_s19 = smov 0   ;;  %s2034_s0 = inlined_call_operand.vmem [shape: f32[8,32], index: 0, kind: input, shape index: {}]   ;;  %s2035_s1 = inlined_call_operand.vmem [shape: f32[2,32,128], index: 1, kind: input, shape index: {}]   ;;  %s2036_s2 = inlined_call_operand.vmem [shape: f32[2,1,128], index: 2, kind: input, shape index: {}]   ;;  %s2037_s3 = inlined_call_operand.vmem [shape: f32[2,32,15], index: 3, kind: input, shape index: {}]   ;;  %s2038_s4 = inlined_call_operand.vmem [shape: f32[2,1,15], index: 4, kind: input, shape index: {}]   ;;  %s2039_s5 = inlined_call_operand.vmem [shape: f32[2,8,1], index: 5, kind: output, shape index: {}]  }
   0x1   :  { %s1835_s20 = smov 0  }
   0x2 LB: > { %s27_s21 = sadd.s32 1, %s1792_s19  ;;  %p1445_p0 = scmp.ge.s32.totalorder %s1796_s20, 1  ;;  %s1796_s20 = sphi %s1835_s20, %s15_s20   ;;  %s1792_s19 = sphi %s1833_s19, %s2041_s19   ;;  %s1788_s18 = sphi %s1831_s18, %s2040_s18  }
   0x3   : > { %p29_p1 = scmp.ge.s32.totalorder %s27_s21, 2  ;;  %p236_p2 = scmp.lt.s32.totalorder %s1796_s20, 3 }
   0x5   : > { %s2043_s21 = smov (%p29_p1, %s27_s21), 0  ;;  %p237_p3 = pnand %p1445_p0, %p236_p2 }
   0x6   : > { %p285_p4 = scmp.lt.s32.totalorder (!%p237_p3), %s1788_s18, 1  ;;  %v308_v0 = vld [vmem:[%s2034_s0] sm:$0xff] (!%p237_p3)  ;;  %vm320_vm0 = vcmask (!%p237_p3), 261120   ;;  %v1798_v1 = vmov (!%p237_p3), 0.0|0.0   ;;  %vm1799_vm1 = vmmov (!%p237_p3), 0   ;;  %v1800_v2 = vmov (!%p237_p3), 0.0  }
   0x7   : > { %240 = sbr.rel (%p237_p3) target bundleno = 600 (0x258), region = 40  ;;  %1649 = vmatprep.subr.bf16.mxu0 (!%p237_p3), %v1798_v1  ;;  %1525 = vmatprep.mubr.msk.f32.mxu0 (!%p237_p3), %vm1799_vm1, %v1800_v2  ;;  %v322_v3 = vsel (!%p237_p3), %vm320_vm0, %v308_v0, 0  ;;  %vm1316_vm2 = vcmask (!%p237_p3), 121856   ;;  %vm1321_vm3 = vcmask (!%p237_p3), 7168  }
   0x8   : > { %v1857_v4 = vand.u32 (!%p237_p3), 4294901760, %v322_v3  ;;  %1685 = vmatprep.subr.bf16.mxu1 (!%p237_p3), %v1798_v1  ;;  %1591 = vmatprep.mubr.msk.f32.mxu1 (!%p237_p3), %vm1799_vm1, %v1800_v2 }
   0xa   : > { %v1864_v5 = vsub.f32 (!%p237_p3), %v322_v3, %v1857_v4 }
   0xc   : > { %v1873_v9 = vand.u32 (!%p237_p3), 4294901760, %v1864_v5 }
   0xe   : > { %s2045_s18 = smov (!%p285_p4, %s1788_s18), 1  ;;  %v396_v24 = vsub.f32 %v1864_v5, %v1873_v9 }
   0xf   : > { %s1455_s24 = sshll.u32 %s2045_s18, 5  ;;  %s292_s8 = scalar_lea.vmem %s2036_s2, %s2045_s18 }
  0x10   : > { %s289_s27 = scalar_lea.vmem %s2035_s1, %s1455_s24  ;;  %s297_s30 = scalar_lea.vmem %s2037_s3, %s1455_s24  ;;  %v397_v38 = vand.u32 4294901760, %v396_v24 }
  0x11   : > { %v309_v6 = vld [vmem:[%s289_s27] sm:$0xff]  ;;  %v310_v7 = vld [vmem:[%s289_s27 + $0x8] sm:$0xff]  ;;  %v311_v8 = vld [vmem:[%s289_s27 + $0x10] sm:$0xff]  ;;  %s300_s11 = scalar_lea.vmem %s2038_s4, %s2045_s18  ;;  %s1450_s12 = sshll.u32 %s2045_s18, 3 }
  0x12   : > { %v325_v10 = vand.u32 4294901760, %v309_v6  ;;  %v328_v11 = vand.u32 4294901760, %v310_v7  ;;  %v312_v12 = vld [vmem:[%s289_s27 + $0x18] sm:$0xff]  ;;  %v331_v13 = vand.u32 4294901760, %v311_v8  ;;  %v819_v14 = vld [vmem:[%s297_s30] sm:$0xff]  ;;  %v820_v15 = vld [vmem:[%s297_s30 + $0x8] sm:$0xff]  ;;  %s307_s15 = scalar_lea.vmem %s2039_s5, %s1450_s12 }
  0x13   : > { %v334_v16 = vand.u32 4294901760, %v312_v12  ;;  %v831_v17 = vand.u32 4294901760, %v819_v14  ;;  %v834_v18 = vand.u32 4294901760, %v820_v15  ;;  %v821_v30 = vld [vmem:[%s297_s30 + $0x10] sm:$0xff]  ;;  %v822_v31 = vld [vmem:[%s297_s30 + $0x18] sm:$0xff] }
  0x14   : > { %v1875_v19 = vpack.c.bf16 %v328_v11, %v325_v10  ;;  %v1877_v20 = vsub.f32 %v309_v6, %v325_v10  ;;  %v1879_v21 = vsub.f32 %v310_v7, %v328_v11  ;;  %v1881_v22 = vsub.f32 %v311_v8, %v331_v13 }
  0x15   : > { %v1883_v23 = vsub.f32 %v312_v12, %v334_v16  ;;  %v1887_v25 = vpack.c.bf16 %v834_v18, %v831_v17  ;;  %v1890_v26 = vpack.c.bf16 %v334_v16, %v331_v13  ;;  %v1898_v33 = vsub.f32 %v819_v14, %v831_v17 }
  0x16   : > { %1651 = vmatpush3.bf16.msra.mxu0 %v1875_v19  ;;  %v406_v27 = vand.u32 4294901760, %v1877_v20  ;;  %v413_v28 = vand.u32 4294901760, %v1879_v21  ;;  %v420_v29 = vand.u32 4294901760, %v1881_v22  ;;  %v1909_v37 = vsub.f32 %v820_v15, %v834_v18 }
  0x17   : > { %1652 = vmatprep.subr.bf16.mxu0 %v1798_v1  ;;  %v427_v32 = vand.u32 4294901760, %v1883_v23  ;;  %1687 = vmatpush3.bf16.msra.mxu1 %v1887_v25  ;;  %v837_v40 = vand.u32 4294901760, %v821_v30  ;;  %v840_v41 = vand.u32 4294901760, %v822_v31  ;;  %v912_v45 = vand.u32 4294901760, %v1898_v33 }
  0x18   : > { %v407_v34 = vsub.f32 %v1877_v20, %v406_v27  ;;  %v414_v35 = vsub.f32 %v1879_v21, %v413_v28  ;;  %v421_v36 = vsub.f32 %v1881_v22, %v420_v29  ;;  %1688 = vmatprep.subr.bf16.mxu1 %v1798_v1  ;;  %v919_v52 = vand.u32 4294901760, %v1909_v37 }
  0x19   : > { %v428_v39 = vsub.f32 %v1883_v23, %v427_v32  ;;  %v1918_v47 = vpack.c.bf16 %v840_v41, %v837_v40  ;;  %v1920_v48 = vsub.f32 %v821_v30, %v837_v40  ;;  %v1922_v49 = vsub.f32 %v822_v31, %v840_v41 }
  0x1a   : > { %1654 = vmatpush3.bf16.msra.mxu0 %v1890_v26  ;;  %v408_v42 = vand.u32 4294901760, %v407_v34  ;;  %v415_v43 = vand.u32 4294901760, %v414_v35  ;;  %v422_v44 = vand.u32 4294901760, %v421_v36  ;;  %v913_v51 = vsub.f32 %v1898_v33, %v912_v45 }
  0x1b   : > { %1655 = vmatprep.subr.bf16.mxu0 %v1798_v1  ;;  %v429_v46 = vand.u32 4294901760, %v428_v39  ;;  %1690 = vmatpush3.bf16.msra.mxu1 %v1918_v47  ;;  %v926_v53 = vand.u32 4294901760, %v1920_v48  ;;  %v933_v54 = vand.u32 4294901760, %v1922_v49  ;;  %v920_v57 = vsub.f32 %v1909_v37, %v919_v52 }
  0x1c   : > { %v1656_v50 = vpack.c.bf16 %v415_v43, %v408_v42  ;;  %v914_v56 = vand.u32 4294901760, %v913_v51  ;;  %1691 = vmatprep.subr.bf16.mxu1 %v1798_v1  ;;  %v1662_v63 = vpack.c.bf16 %v1879_v21, %v1877_v20  ;;  %v1665_v6 = vpack.c.bf16 %v1883_v23, %v1881_v22 }
  0x1d   : > { %1526 = vmatmul.mubr.f32.vlgmr.msra.gmra.mrb[0].mxu0 %v397_v38  ;;  %v1659_v55 = vpack.c.bf16 %v429_v46, %v422_v44  ;;  %v927_v58 = vsub.f32 %v1920_v48, %v926_v53  ;;  %v934_v59 = vsub.f32 %v1922_v49, %v933_v54  ;;  %v921_v60 = vand.u32 4294901760, %v920_v57 }
  0x1e   : > { %1657 = vmatpush3.bf16.msra.mxu0 %v1656_v50  ;;  %1536 = vmatprep.mubr.msk.f32.mxu0 %vm1799_vm1, %v1800_v2  ;;  %v1698_v7 = vpack.c.bf16 %v1909_v37, %v1898_v33  ;;  %v1701_v8 = vpack.c.bf16 %v1922_v49, %v1920_v48  ;;  %v1674_v10 = vpack.c.bf16 %v413_v28, %v406_v27 }
  0x1f   : > { %1658 = vmatprep.subr.bf16.mxu0 %v1798_v1  ;;  %1592 = vmatmul.mubr.f32.vlgmr.msra.gmra.mrb[0].mxu1 %v397_v38  ;;  %v928_v61 = vand.u32 4294901760, %v927_v58  ;;  %v935_v62 = vand.u32 4294901760, %v934_v59  ;;  %v1692_v0 = vpack.c.bf16 %v921_v60, %v914_v56  ;;  %v1677_v11 = vpack.c.bf16 %v427_v32, %v420_v29 }
  0x20   : > { %1602 = vmatprep.mubr.msk.f32.mxu1 %vm1799_vm1, %v1800_v2  ;;  %v1713_v12 = vpack.c.bf16 %v933_v54, %v926_v53 }
  0x21   : > { %1693 = vmatpush3.bf16.msra.mxu1 %v1692_v0  ;;  %v1695_v3 = vpack.c.bf16 %v935_v62, %v928_v61 }
  0x22   : > { %1660 = vmatpush3.bf16.msra.mxu0 %v1659_v55  ;;  %1694 = vmatprep.subr.bf16.mxu1 %v1798_v1 }
  0x23   : > { %1661 = vmatprep.subr.bf16.mxu0 %v1798_v1 }
  0x25   : > { %1537 = vmatmul.mubr.f32.vlgmr.msra.gmra.mrb[0].mxu0 %v1857_v4  ;;  %1696 = vmatpush3.bf16.msra.mxu1 %v1695_v3 }
  0x26   : > { %1663 = vmatpush3.bf16.msra.mxu0 %v1662_v63  ;;  %1547 = vmatprep.mubr.msk.f32.mxu0 %vm1799_vm1, %v1800_v2 }
  0x27   : > { %1664 = vmatprep.subr.bf16.mxu0 %v1798_v1  ;;  %1697 = vmatprep.subr.bf16.mxu1 %v1798_v1 }
  0x28   : > { %1603 = vmatmul.mubr.f32.vlgmr.msra.gmra.mrb[0].mxu1 %v1857_v4 }
  0x29   : > { %1699 = vmatpush3.bf16.msra.mxu1 %v1698_v7  ;;  %1613 = vmatprep.mubr.msk.f32.mxu1 %vm1799_vm1, %v1800_v2 }
  0x2a   : > { %1666 = vmatpush3.bf16.msra.mxu0 %v1665_v6  ;;  %1700 = vmatprep.subr.bf16.mxu1 %v1798_v1 }
  0x2b   : > { %1667 = vmatprep.subr.bf16.mxu0 %v1798_v1 }
  0x2d   : > { %1548 = vmatmul.mubr.f32.vlgmr.msra.gmra.mrb[0].mxu0 %v1864_v5  ;;  %1702 = vmatpush3.bf16.msra.mxu1 %v1701_v8 }
  0x2e   : > { %1669 = vmatpush3.bf16.msra.mxu0 %v1875_v19  ;;  %1558 = vmatprep.mubr.msk.f32.mxu0 %vm1799_vm1, %v1800_v2 }
  0x2f   : > { %1670 = vmatprep.subr.bf16.mxu0 %v1798_v1  ;;  %1703 = vmatprep.subr.bf16.mxu1 %v1798_v1 }
  0x30   : > { %1614 = vmatmul.mubr.f32.vlgmr.msra.gmra.mrb[0].mxu1 %v1864_v5  ;;  %v1710_v5 = vpack.c.bf16 %v919_v52, %v912_v45 }
  0x31   : > { %1705 = vmatpush3.bf16.msra.mxu1 %v1887_v25  ;;  %1624 = vmatprep.mubr.msk.f32.mxu1 %vm1799_vm1, %v1800_v2 }
  0x32   : > { %1672 = vmatpush3.bf16.msra.mxu0 %v1890_v26  ;;  %1706 = vmatprep.subr.bf16.mxu1 %v1798_v1 }
  0x33   : > { %1673 = vmatprep.subr.bf16.mxu0 %v1798_v1 }
  0x35   : > { %1559 = vmatmul.mubr.f32.vlgmr.msra.gmra.mrb[0].mxu0 %v1873_v9  ;;  %1708 = vmatpush3.bf16.msra.mxu1 %v1918_v47 }
  0x36   : > { %1675 = vmatpush3.bf16.msra.mxu0 %v1674_v10  ;;  %1569 = vmatprep.mubr.msk.f32.mxu0 %vm1799_vm1, %v1800_v2 }
  0x37   : > { %1676 = vmatprep.subr.bf16.mxu0 %v1798_v1  ;;  %1709 = vmatprep.subr.bf16.mxu1 %v1798_v1 }
  0x38   : > { %1625 = vmatmul.mubr.f32.vlgmr.msra.gmra.mrb[0].mxu1 %v1873_v9  ;;  %v1451_v9 = vld [vmem:[%s292_s8] ss:$0 sm:$0xff] }
  0x39   : > { %1711 = vmatpush3.bf16.msra.mxu1 %v1710_v5  ;;  %1635 = vmatprep.mubr.msk.f32.mxu1 %vm1799_vm1, %v1800_v2 }
  0x3a   : > { %1678 = vmatpush3.bf16.msra.mxu0 %v1677_v11  ;;  %1712 = vmatprep.subr.bf16.mxu1 %v1798_v1 }
  0x3b   : > { %1679 = vmatprep.subr.bf16.mxu0 %v1798_v1 }
  0x3d   : > { %1570 = vmatmul.mubr.f32.vlgmr.msra.gmra.mrb[0].mxu0 %v1857_v4  ;;  %1714 = vmatpush3.bf16.msra.mxu1 %v1713_v12 }
  0x3e   : > { %1681 = vmatpush3.bf16.msra.mxu0 %v1875_v19  ;;  %1580 = vmatprep.mubr.msk.f32.mxu0 %vm1799_vm1, %v1800_v2 }
  0x3f   : > { %1682 = vmatprep.subr.bf16.mxu0 %v1798_v1  ;;  %1715 = vmatprep.subr.bf16.mxu1 %v1798_v1 }
  0x40   : > { %1636 = vmatmul.mubr.f32.vlgmr.msra.gmra.mrb[0].mxu1 %v1857_v4 }
  0x41   : > { %1717 = vmatpush3.bf16.msra.mxu1 %v1887_v25  ;;  %1646 = vmatprep.mubr.msk.f32.mxu1 %vm1799_vm1, %v1800_v2  ;;  %v1452_v2 = vld [vmem:[%s300_s11] ss:$0 sm:$0xff] }
  0x42   : > { %1684 = vmatpush3.bf16.msra.mxu0 %v1890_v26  ;;  %1718 = vmatprep.subr.bf16.mxu1 %v1798_v1 }
  0x45   : > { %1581 = vmatmul.mubr.f32.vlgmr.msra.gmra.mrb[0].mxu0 %v1857_v4  ;;  %1720 = vmatpush3.bf16.msra.mxu1 %v1918_v47 }
  0x48   : > { %1647 = vmatmul.mubr.f32.vlgmr.msra.gmra.mrb[0].mxu1 %v1857_v4 }
 0x118   : > { %v805_v13 = vpop.f32.mrb[0].mxu0 }
 0x119   : > { %v1721_v14 = vadd.f32 %v1451_v9, %v805_v13  ;;  %v1582_v15 = vpop.f32.mrb[1].mxu0 }
 0x11b   : > { %809 = vmax.xlane.f32.xlu0 %v1721_v14  ;;  %v1311_v16 = vpop.f32.mrb[0].mxu1 }
 0x11c   : > { %v1722_v1 = vadd.f32 %v1452_v2, %v1311_v16  ;;  %v1648_v17 = vpop.f32.mrb[1].mxu1 }
 0x11e   : > { %v1315_v4 = vmul.f32 %v1722_v1, %v1722_v1 }
 0x120   : > { %v1317_v18 = vsel %vm1316_vm2, %v1315_v4, 0.0 }
 0x121   : > { %1318 = vadd.xlane.f32.xlu1 %v1317_v18 }
 0x1a8   : > { %v810_v19 = vpop.xlane.xlu0 %809 }
 0x1a9   : > { %v811_v20 = vsub.f32 %v1721_v14, %v810_v19 }
 0x1ab   : > { %v812_v21 = vmul.f32 1.442695, %v811_v20 }
 0x1ad   : > { %1770 = vpow2.f32 %v812_v21 }
 0x1ae   : > { %v1319_v27 = vpop.xlane.xlu1 %1318 }
 0x1b7   : > { %v1771_v22 = vpop.eup %1770 }
 0x1b8   : > { %814 = vadd.xlane.f32.xlu0 %v1771_v22 }
 0x245   : > { %v815_v23 = vpop.xlane.xlu0 %814 }
 0x246   : > { %1772 = vlog2.f32 %v815_v23 }
 0x250   : > { %v1773_v24 = vpop.eup %1772 }
 0x251   : > { %v817_v25 = vmul.f32 0.6931472, %v1773_v24 }
 0x253   : > { %v818_v26 = vadd.f32 %v817_v25, %v810_v19 }
 0x255   : > { %v1320_v28 = vsub.f32 %v818_v26, %v1319_v27 }
 0x257   : > { %1322 = vst.msk [vmem:[%s307_s15] sm:$0xff] %vm1321_vm3, %v1320_v28 }
 0x258 PF: > { %s15_s20 = sadd.s32 1, %s1796_s20   ;;  %s2040_s18 = smov %s1792_s19 }
 0x259   : > { %p12_p5 = scmp.ge.s32.totalorder %s15_s20, 4   ;;  %s2041_s19 = smov %s2043_s21 }
 0x25b   :  { %14 = sbr.rel (!%p12_p5) target bundleno = 2 (0x2), region = 82 }

</bundles_post_ra>
